<compile_context>
chip_gen: v5e
topology: v5e:2x2
jax: 0.10.0
libtpu: 0.0.40
codegen_flags: <defaults>
</compile_context>

<pallas_src>
import functools

import jax
import jax.numpy as jnp
from jax import lax
from jax.experimental import pallas as pl
from jax.experimental.pallas import tpu as pltpu

_LANES = 128
_SUB = 8                 # f32 sublane pack (accumulator / output tile height)
_CHUNK_ROWS = 512        # in-kernel chunk (multiple of 32 -> native for all dtypes)
_SPLIT_MIN_ROWS = 2048   # below this, keep a single block / grid step
_EPS = 1e-6


def _partial_sumsq_kernel(x_ref, y_ref, o_ref, *, block_rows, chunk_rows,
                          kernel_rows, has_tail):
    """Per-block partial sum of (x - y)^2, reduced to a (1, 8, 128) f32 tile."""
    nchunks = block_rows // chunk_rows   # static
    g = chunk_rows // _SUB               # static

    def chunk_sum(c, masked):
        off = c * chunk_rows
        if not isinstance(off, int):
            off = pl.multiple_of(off, chunk_rows)
        xs = x_ref[pl.ds(off, chunk_rows), :].astype(jnp.float32)
        ys = y_ref[pl.ds(off, chunk_rows), :].astype(jnp.float32)
        d = xs - ys
        sq = d * d
        if masked:
            row = (pl.program_id(0) * block_rows + c * chunk_rows
                   + lax.broadcasted_iota(jnp.int32, sq.shape, 0))
            sq = jnp.where(row < kernel_rows, sq, 0.0)
        # Sublane-group reduce: pure VALU adds into one (8, 128) f32 vreg.
        return jnp.sum(sq.reshape(g, _SUB, _LANES), axis=0)

    if nchunks == 1 and not has_tail:
        # Tiny / single-chunk block: no loop scaffolding at all.
        o_ref[...] = chunk_sum(0, False).reshape(1, _SUB, _LANES)
        return

    acc0 = jnp.zeros((_SUB, _LANES), jnp.float32)
    if not has_tail:
        acc = lax.fori_loop(0, nchunks,
                            lambda c, a: a + chunk_sum(c, False), acc0)
    else:
        # Only the last grid block can overhang kernel_rows.  Run the unmasked
        # steady-state loop over fully-valid chunks; mask ops only execute for
        # the (at most one) chunk that straddles the boundary.
        start = pl.program_id(0) * block_rows
        valid = jnp.minimum(kernel_rows - start, block_rows)
        n_full = valid // chunk_rows
        n_any = (valid + chunk_rows - 1) // chunk_rows
        acc = lax.fori_loop(0, n_full,
                            lambda c, a: a + chunk_sum(c, False), acc0)
        acc = lax.fori_loop(n_full, n_any,
                            lambda c, a: a + chunk_sum(c, True), acc)
    o_ref[...] = acc.reshape(1, _SUB, _LANES)


def _round_up(x, m):
    return ((x + m - 1) // m) * m


def _choose_blocking(rows, itemsize, tile_rows):
    """Pick (block_rows, grid, chunk_rows) for the (rows, 128) sweep.

    `rows` is a multiple of 8.  Guarantees block_rows % chunk_rows == 0,
    chunk_rows % 8 == 0, and that only the last grid block may overhang.
    """
    if tile_rows is None:
        # ~4 MiB of HBM bytes per input per grid step (8192 f32 / 16384 bf16).
        tile_rows = (4 << 20) // (_LANES * itemsize)
    tile_rows = max(_CHUNK_ROWS, (tile_rows // _CHUNK_ROWS) * _CHUNK_ROWS)

    if rows <= max(_SPLIT_MIN_ROWS, _CHUNK_ROWS):
        return rows, 1, rows            # one full-extent block, one chunk

    # Even number of roughly equal blocks so v7x's two TensorCores both get
    # work along the 'parallel' grid axis (no-op on single-TC v5e/v6e).
    grid = max(2, 2 * pl.cdiv(rows, 2 * tile_rows))
    block_rows = _round_up(pl.cdiv(rows, grid), _CHUNK_ROWS)   # <= tile_rows
    grid = pl.cdiv(rows, block_rows)
    return block_rows, grid, _CHUNK_ROWS


def rmse_loss(x, y, *, tile_rows=None):
    assert x.shape == y.shape, "RMSELoss expects x and y of the same shape"
    n = x.size
    itemsize = jnp.dtype(x.dtype).itemsize

    # Flatten without copying (no astype, no full-array pad).
    xf = jnp.ravel(x)
    yf = jnp.ravel(y)

    # Kernel sweeps rows of 128 lanes; keep the kernel row count a multiple of
    # 8 so every in-kernel reshape/reduce stays (8,128)-tile aligned.  The
    # tiny (< 1024-element) flat remainder is summed in plain JAX.
    rows = (n // (_SUB * _LANES)) * _SUB
    n_k = rows * _LANES

    total = jnp.float32(0.0)

    if rows > 0:
        x2 = (xf if n_k == n else xf[:n_k]).reshape(rows, _LANES)
        y2 = (yf if n_k == n else yf[:n_k]).reshape(rows, _LANES)

        block_rows, grid, chunk_rows = _choose_blocking(rows, itemsize,
                                                        tile_rows)
        has_tail = (rows % block_rows) != 0

        kernel = functools.partial(
            _partial_sumsq_kernel,
            block_rows=block_rows,
            chunk_rows=chunk_rows,
            kernel_rows=rows,
            has_tail=has_tail,
        )

        # 2 inputs x 2 pipeline buffers + a few chunk-sized f32 intermediates.
        in_block_bytes = block_rows * _LANES * itemsize
        vmem_limit = int(min(
            max(4 * in_block_bytes + 8 * chunk_rows * _LANES * 4 + (4 << 20),
                16 << 20),
            48 << 20))

        partials = pl.pallas_call(
            kernel,
            out_shape=jax.ShapeDtypeStruct((grid, _SUB, _LANES), jnp.float32),
            grid_spec=pltpu.PrefetchScalarGridSpec(
                num_scalar_prefetch=0,
                grid=(grid,),
                in_specs=[
                    pl.BlockSpec((block_rows, _LANES), lambda i: (i, 0)),
                    pl.BlockSpec((block_rows, _LANES), lambda i: (i, 0)),
                ],
                out_specs=pl.BlockSpec((1, _SUB, _LANES),
                                       lambda i: (i, 0, 0)),
            ),
            compiler_params=pltpu.CompilerParams(
                # Independent per-block partials -> shardable across TCs (v7x).
                dimension_semantics=("parallel",),
                vmem_limit_bytes=vmem_limit,
            ),
        )(x2, y2)
        total = total + jnp.sum(partials)

    if n_k < n:
        # Sub-1024-element flat remainder: negligible, do it in plain JAX
        # instead of padding the whole input arrays.
        dt = xf[n_k:].astype(jnp.float32) - yf[n_k:].astype(jnp.float32)
        total = total + jnp.sum(dt * dt)

    return jnp.sqrt(total / jnp.float32(n) + jnp.float32(_EPS))


if __name__ == "__main__":
    key = jax.random.PRNGKey(0)
    kx, ky = jax.random.split(key)
    # NCHW-like inputs, as the PyTorch module would typically receive.
    x = jax.random.normal(kx, (2, 4, 16, 16), dtype=jnp.float32)
    y = jax.random.normal(ky, (2, 4, 16, 16), dtype=jnp.float32)

    loss = jax.jit(rmse_loss)(x, y)
    jax.block_until_ready(loss)

    # Pure-JAX reference check.
    ref = jnp.sqrt(jnp.mean((x - y) ** 2) + _EPS)
    assert jnp.allclose(loss, ref, rtol=1e-5, atol=1e-6), (loss, ref)

    print("KERNEL_OK")
</pallas_src>

<mosaic_0001>
module attributes {stable_mosaic.version = 11 : i64} {
  func.func @_partial_sumsq_kernel(%arg0: i32, %arg1: memref<16x128xf32, #tpu.memory_space<vmem>>, %arg2: memref<16x128xf32, #tpu.memory_space<vmem>>, %arg3: memref<1x8x128xf32, #tpu.memory_space<vmem>>) attributes {dimension_semantics = [#tpu.dimension_semantics<parallel>], iteration_bounds = array<i64: 1>, scalar_prefetch = 0 : i64, scratch_operands = 0 : i64, tpu.core_type = #tpu.core_type<tc>, window_params = [{transform_indices = @transform_0, window_bounds = array<i64: 16, 128>}, {transform_indices = @transform_1, window_bounds = array<i64: 16, 128>}, {transform_indices = @transform_2, window_bounds = array<i64: 1, 8, 128>}]} {
    %c0 = arith.constant 0 : index
    %c0_0 = arith.constant 0 : index
    %0 = vector.load %arg1[%c0, %c0_0] : memref<16x128xf32, #tpu.memory_space<vmem>>, vector<16x128xf32>
    %c0_1 = arith.constant 0 : index
    %c0_2 = arith.constant 0 : index
    %1 = vector.load %arg2[%c0_1, %c0_2] : memref<16x128xf32, #tpu.memory_space<vmem>>, vector<16x128xf32>
    %2 = arith.subf %0, %1 : vector<16x128xf32>
    %3 = arith.mulf %2, %2 : vector<16x128xf32>
    %4 = vector.shape_cast %3 : vector<16x128xf32> to vector<2x8x128xf32>
    %cst = arith.constant dense<0.000000e+00> : vector<8x128xf32>
    %5 = vector.multi_reduction <add>, %4, %cst [0] : vector<2x8x128xf32> to vector<8x128xf32>
    %6 = vector.shape_cast %5 : vector<8x128xf32> to vector<1x8x128xf32>
    %c0_3 = arith.constant 0 : index
    %c0_4 = arith.constant 0 : index
    %c0_5 = arith.constant 0 : index
    %7 = vector.load %arg3[%c0_3, %c0_4, %c0_5] : memref<1x8x128xf32, #tpu.memory_space<vmem>>, vector<1x8x128xf32>
    tpu.vector_store %arg3[%c0_3, %c0_4, %c0_5], %6 {strides = array<i32>} : memref<1x8x128xf32, #tpu.memory_space<vmem>>, vector<1x8x128xf32>,
    return
  }
  func.func @transform_0(%arg0: i32) -> (i32, i32) {
    %c0_i32 = arith.constant 0 : i32
    %c0_i32_0 = arith.constant 0 : i32
    return %arg0, %c0_i32 : i32, i32
  }
  func.func @transform_1(%arg0: i32) -> (i32, i32) {
    %c0_i32 = arith.constant 0 : i32
    %c0_i32_0 = arith.constant 0 : i32
    return %arg0, %c0_i32 : i32, i32
  }
  func.func @transform_2(%arg0: i32) -> (i32, i32, i32) {
    %c0_i32 = arith.constant 0 : i32
    %c0_i32_0 = arith.constant 0 : i32
    %c0_i32_1 = arith.constant 0 : i32
    return %arg0, %c0_i32, %c0_i32_0 : i32, i32, i32
  }
}

</mosaic_0001>

<bundles_post_ra>
// kernel: rmse_loss.1
= control target key start
LH: loop header
LB: loop body
LE: loop exit
PB: predicated region body
PF: predicated region fallthrough
CT: control target
= control target key end

     0   :  { %s55_s0 = inlined_call_operand.vmem [shape: f32[16,128], index: 0, kind: input, shape index: {}]   ;;  %s56_s1 = inlined_call_operand.vmem [shape: f32[16,128], index: 1, kind: input, shape index: {}]   ;;  %s57_s2 = inlined_call_operand.vmem [shape: f32[1,8,128], index: 2, kind: output, shape index: {}]  }
   0x1   :  { %v11_v0 = vld [vmem:[%s55_s0] sm:$0xff]  ;;  %v12_v1 = vld [vmem:[%s55_s0 + $0x8] sm:$0xff] }
   0x2   :  { %v13_v2 = vld [vmem:[%s56_s1] sm:$0xff]  ;;  %v14_v3 = vld [vmem:[%s56_s1 + $0x8] sm:$0xff] }
   0x3   :  { %v15_v4 = vsub.f32 %v11_v0, %v13_v2  ;;  %v16_v5 = vsub.f32 %v12_v1, %v14_v3 }
   0x5   :  { %v17_v6 = vmul.f32 %v15_v4, %v15_v4  ;;  %v18_v7 = vmul.f32 %v16_v5, %v16_v5 }
   0x7   :  { %v19_v8 = vadd.f32 %v18_v7, %v17_v6 }
   0x9   :  { %20 = vst [vmem:[%s57_s2] sm:$0xff] %v19_v8 }

</bundles_post_ra>
